<compile_context>
chip_gen: v7x
topology: tpu7x:2x2x1
jax: 0.10.0
libtpu: 0.0.40
codegen_flags: <defaults>
</compile_context>

<pallas_src>
import functools

import jax
import jax.numpy as jnp
from jax import lax
from jax.experimental import pallas as pl
from jax.experimental.pallas import tpu as pltpu

LN_EPS = 1e-5        # nn.LayerNorm default eps
DROPOUT = 0.2        # eval-mode identity (see TODO in _ln_relu_residual)


def _round_up(v, m):
    return (v + m - 1) // m * m


def _round_down(v, m):
    return (v // m) * m


def _device_kind():
    try:
        return jax.devices()[0].device_kind.lower()
    except Exception:
        return ""


def _vmem_capacity_bytes():
    """Per-TensorCore VMEM capacity, generation-aware with a conservative fallback."""
    try:
        return int(pltpu.get_tpu_info().vmem_capacity_bytes)
    except Exception:
        pass
    kind = _device_kind()
    if "v7" in kind:
        return 64 << 20           # v7x: 64 MiB per TensorCore
    if kind:
        return 128 << 20          # v5e / v6e (and older)
    return 64 << 20               # unknown -> conservative


def _mxu_multiple():
    """Lane multiple that keeps MXU passes full: 256 on v6e/v7x, 128 on <= v5."""
    kind = _device_kind()
    for old in ("v2", "v3", "v4", "v5"):
        if old in kind:
            return 128
    return 256


# ----------------------------------------------------------------------------------------------
# Shared post-matmul math (LayerNorm over the true feature dim -> ReLU -> residual add).
# Invariant (guaranteed by the wrapper): padded columns of h are EXACTLY zero because the padded
# columns of the pre-transposed weight and the padded bias entries are zero.
# ----------------------------------------------------------------------------------------------
def _ln_relu_residual(h, x, gamma, beta, *, true_dim):
    dim_p = h.shape[-1]
    inv_n = jnp.float32(1.0 / true_dim)
    mean = jnp.sum(h, axis=-1, keepdims=True) * inv_n          # unmasked: padded h cols are zero
    centered = h - mean
    ss = jnp.sum(centered * centered, axis=-1, keepdims=True)
    if true_dim != dim_p:
        # Each padded lane contributes exactly (0 - mean)^2 = mean^2; subtract those instead of
        # materializing an iota/compare/select mask (saves ~3 full-tile VPU ops + vregs).
        ss = ss - jnp.float32(dim_p - true_dim) * (mean * mean)
    var = ss * inv_n
    hnorm = centered * lax.rsqrt(var + LN_EPS)
    # gamma/beta are zero in padded lanes -> y is zero there; x is zero there -> out pads stay 0.
    y = jnp.maximum(hnorm * gamma + beta, 0.0)
    # TODO(synk): training-mode dropout (p=0.2) via pltpu.prng_seed(seed + pl.program_id(0)) +
    #             pltpu.prng_random_bits, folding the 1/(1-p) scale into the gamma multiply.
    #             Eval-mode (identity) implemented here, matching module.eval().
    return x + y


# ----------------------------------------------------------------------------------------------
# Plan A: resident bf16 weight, single "parallel" batch-tile grid.
# ----------------------------------------------------------------------------------------------
def _resident_kernel(x_ref, w_ref, b_ref, g_ref, be_ref, o_ref, *, true_dim):
    # x_ref: (tb, dim_p) f32.   w_ref: (dim_p, dim_p) bf16, PRE-TRANSPOSED to [in, out] layout.
    x = x_ref[...]
    h = lax.dot_general(                                       # plain contraction, no RHS transpose
        x.astype(jnp.bfloat16), w_ref[...],
        dimension_numbers=(((1,), (0,)), ((), ())),
        preferred_element_type=jnp.float32,
    ) + b_ref[...]
    o_ref[...] = _ln_relu_residual(h, x, g_ref[...], be_ref[...],
                                   true_dim=true_dim).astype(o_ref.dtype)


# ----------------------------------------------------------------------------------------------
# Plan B: K-reduction grid (weight streamed in (tk, dim_p) chunks), f32 accumulator in VMEM.
# ----------------------------------------------------------------------------------------------
def _ksplit_kernel(xk_ref, w_ref, b_ref, g_ref, be_ref, xfull_ref, o_ref, acc_ref, *, true_dim):
    k = pl.program_id(1)

    @pl.when(k == 0)
    def _():
        acc_ref[...] = jnp.zeros_like(acc_ref)

    acc_ref[...] += lax.dot_general(
        xk_ref[...].astype(jnp.bfloat16), w_ref[...],
        dimension_numbers=(((1,), (0,)), ((), ())),
        preferred_element_type=jnp.float32,
    )

    @pl.when(k == pl.num_programs(1) - 1)
    def _():
        h = acc_ref[...] + b_ref[...]
        o_ref[...] = _ln_relu_residual(h, xfull_ref[...], g_ref[...], be_ref[...],
                                       true_dim=true_dim).astype(o_ref.dtype)


# ----------------------------------------------------------------------------------------------
# VMEM budgets (per TensorCore).
# ----------------------------------------------------------------------------------------------
def _resident_vmem_bytes(tb, dim_p):
    return (dim_p * dim_p * 2            # resident bf16 weight (single-buffered)
            + 3 * dim_p * 4              # bias / gamma / beta (f32, single-buffered)
            + 2 * 2 * tb * dim_p * 4     # x + out tiles, double-buffered, f32
            + 6 * tb * dim_p * 4)        # f32 intermediates (h, centered, hnorm, y, ...) headroom


def _ksplit_vmem_bytes(tb, tk, dim_p):
    return (2 * tk * dim_p * 2           # W K-tile, bf16, double-buffered
            + 2 * tb * tk * 4            # x K-chunk, f32, double-buffered
            + 2 * tb * dim_p * 4         # full-width x tile (residual), double-buffered
            + 2 * tb * dim_p * 4         # out tile, double-buffered
            + tb * dim_p * 4             # f32 accumulator scratch
            + 3 * dim_p * 4              # bias / gamma / beta
            + 6 * tb * dim_p * 4)        # f32 intermediates headroom


# ----------------------------------------------------------------------------------------------
# Wrapper.
# ----------------------------------------------------------------------------------------------
def residual_block(x, w, b, gamma, beta, *, tb=None, tk=None, force_k_split=False):
    """x: [B, dim] f32.  w: [dim, dim] PyTorch Linear weight (y = x @ w.T + b). Eval-mode dropout."""
    B, dim = x.shape
    assert w.shape == (dim, dim)

    # Lane-dense feature padding; bump to a 256 multiple on 256-wide-MXU chips when the 128-padded
    # size would leave a half-filled trailing MXU chunk (skip tiny dims where that only wastes FLOPs).
    dim_p = _round_up(dim, 128)
    if _mxu_multiple() == 256 and dim_p % 256 != 0 and dim_p >= 384:
        dim_p = _round_up(dim_p, 256)

    vmem_cap = _vmem_capacity_bytes()
    budget = vmem_cap - (8 << 20)        # margin for Mosaic-internal scratch

    # Batch tile: default 512 (amortizes the ~0.35us/step overhead on v5e/v6e), clamped to the
    # batch and shrunk until the plan fits VMEM. The batch is NEVER padded: grid = cdiv(B, tb)
    # and Pallas masks the ragged final tile.
    if tb is None:
        tb = max(8, _round_up(min(512, _round_up(B, 8)), 8))
        while tb > 8 and _resident_vmem_bytes(tb, dim_p) > budget:
            tb = max(8, _round_down(tb // 2, 8))
    else:
        tb = max(8, _round_up(tb, 8))

    use_ksplit = force_k_split or _resident_vmem_bytes(tb, dim_p) > budget

    # --- pad / cast parameters once (in production, do this at init, outside the hot path). ---
    # W is stored TRANSPOSED to [in, out]: the kernel contracts (1, 0) with no per-step XLU work.
    w_t = jnp.zeros((dim_p, dim_p), jnp.bfloat16).at[:dim, :dim].set(
        jnp.transpose(w).astype(jnp.bfloat16))
    b_p = jnp.zeros((1, dim_p), jnp.float32).at[0, :dim].set(b.astype(jnp.float32))
    g_p = jnp.zeros((1, dim_p), jnp.float32).at[0, :dim].set(gamma.astype(jnp.float32))
    be_p = jnp.zeros((1, dim_p), jnp.float32).at[0, :dim].set(beta.astype(jnp.float32))
    # Only the feature axis of x is padded (never the batch).
    x_p = x if dim_p == dim else jnp.zeros((B, dim_p), x.dtype).at[:, :dim].set(x)

    cost = pl.CostEstimate(
        flops=2 * B * dim_p * dim_p,
        transcendentals=B,                                   # one rsqrt per row
        bytes_accessed=(4 * B * dim_p * (3 if use_ksplit else 2)
                        + 2 * dim_p * dim_p + 3 * 4 * dim_p),
    )

    if not use_ksplit:
        n_btiles = pl.cdiv(B, tb)
        vmem_limit = int(min(max(_resident_vmem_bytes(tb, dim_p) + (2 << 20), 32 << 20), budget))
        out = pl.pallas_call(
            functools.partial(_resident_kernel, true_dim=dim),
            out_shape=jax.ShapeDtypeStruct((B, dim_p), x.dtype),
            grid_spec=pltpu.PrefetchScalarGridSpec(
                num_scalar_prefetch=0,
                grid=(n_btiles,),
                in_specs=[
                    pl.BlockSpec((tb, dim_p), lambda i: (i, 0)),                 # x tile (pipelined)
                    pl.BlockSpec((dim_p, dim_p), lambda i: (0, 0),
                                 pipeline_mode=pl.Buffered(1)),                  # W_t (resident)
                    pl.BlockSpec((1, dim_p), lambda i: (0, 0),
                                 pipeline_mode=pl.Buffered(1)),                  # bias
                    pl.BlockSpec((1, dim_p), lambda i: (0, 0),
                                 pipeline_mode=pl.Buffered(1)),                  # gamma
                    pl.BlockSpec((1, dim_p), lambda i: (0, 0),
                                 pipeline_mode=pl.Buffered(1)),                  # beta
                ],
                out_specs=pl.BlockSpec((tb, dim_p), lambda i: (i, 0)),
            ),
            compiler_params=pltpu.CompilerParams(
                dimension_semantics=(pltpu.PARALLEL,),
                vmem_limit_bytes=vmem_limit,
            ),
            cost_estimate=cost,
        )(x_p, w_t, b_p, g_p, be_p)
    else:
        if tk is None:
            tk = 128
            for cand in (1024, 512, 256, 128):
                if dim_p % cand == 0 and _ksplit_vmem_bytes(tb, cand, dim_p) <= budget:
                    tk = cand
                    break
        assert dim_p % tk == 0, "tk must divide the padded feature dim"
        while tb > 8 and _ksplit_vmem_bytes(tb, tk, dim_p) > budget:
            tb = max(8, _round_down(tb // 2, 8))
        n_btiles = pl.cdiv(B, tb)
        vmem_limit = int(min(max(_ksplit_vmem_bytes(tb, tk, dim_p) + (2 << 20), 32 << 20), budget))
        out = pl.pallas_call(
            functools.partial(_ksplit_kernel, true_dim=dim),
            out_shape=jax.ShapeDtypeStruct((B, dim_p), x.dtype),
            grid_spec=pltpu.PrefetchScalarGridSpec(
                num_scalar_prefetch=0,
                grid=(n_btiles, dim_p // tk),
                in_specs=[
                    pl.BlockSpec((tb, tk), lambda i, k: (i, k)),                 # x K-chunk
                    pl.BlockSpec((tk, dim_p), lambda i, k: (k, 0)),              # W_t K-tile
                    pl.BlockSpec((1, dim_p), lambda i, k: (0, 0),
                                 pipeline_mode=pl.Buffered(1)),                  # bias
                    pl.BlockSpec((1, dim_p), lambda i, k: (0, 0),
                                 pipeline_mode=pl.Buffered(1)),                  # gamma
                    pl.BlockSpec((1, dim_p), lambda i, k: (0, 0),
                                 pipeline_mode=pl.Buffered(1)),                  # beta
                    pl.BlockSpec((tb, dim_p), lambda i, k: (i, 0)),              # x full (residual)
                ],
                out_specs=pl.BlockSpec((tb, dim_p), lambda i, k: (i, 0)),
                scratch_shapes=[pltpu.VMEM((tb, dim_p), jnp.float32)],
            ),
            compiler_params=pltpu.CompilerParams(
                dimension_semantics=(pltpu.PARALLEL, pltpu.ARBITRARY),
                vmem_limit_bytes=vmem_limit,
            ),
            cost_estimate=cost,
        )(x_p, w_t, b_p, g_p, be_p, x_p)

    return out if dim_p == dim else out[:, :dim]


# ----------------------------------------------------------------------------------------------
# References.
# ----------------------------------------------------------------------------------------------
def residual_block_ref_bf16(x, w, b, gamma, beta):
    """Reference with the same bf16-matmul / f32-accumulate numerics as the kernel."""
    h = lax.dot_general(
        x.astype(jnp.bfloat16), w.astype(jnp.bfloat16),
        dimension_numbers=(((1,), (1,)), ((), ())),
        preferred_element_type=jnp.float32,
    ) + b
    mean = jnp.mean(h, axis=-1, keepdims=True)
    var = jnp.mean((h - mean) ** 2, axis=-1, keepdims=True)
    hn = (h - mean) * lax.rsqrt(var + LN_EPS)
    y = jnp.maximum(hn * gamma + beta, 0.0)
    return x + y


def residual_block_ref_f32(x, w, b, gamma, beta):
    """Full-precision reference matching the PyTorch module (eval mode)."""
    h = x @ w.T + b
    mean = jnp.mean(h, axis=-1, keepdims=True)
    var = jnp.mean((h - mean) ** 2, axis=-1, keepdims=True)
    hn = (h - mean) / jnp.sqrt(var + LN_EPS)
    y = jnp.maximum(hn * gamma + beta, 0.0)
    return x + y


if __name__ == "__main__":
    key = jax.random.PRNGKey(0)

    # ---- case 1: resident-weight plan, feature-padded dim, 2-step batch grid. ----
    B, dim = 16, 32
    kx, kw, kb = jax.random.split(key, 3)
    x = jax.random.normal(kx, (B, dim), dtype=jnp.float32)
    bound = 1.0 / (dim ** 0.5)
    w = jax.random.uniform(kw, (dim, dim), jnp.float32, -bound, bound)
    b = jax.random.uniform(kb, (dim,), jnp.float32, -bound, bound)
    gamma = jnp.ones((dim,), jnp.float32)    # LayerNorm defaults
    beta = jnp.zeros((dim,), jnp.float32)

    out = jax.block_until_ready(residual_block(x, w, b, gamma, beta, tb=8))
    assert out.shape == (B, dim)
    ref_bf16 = residual_block_ref_bf16(x, w, b, gamma, beta)
    ref_f32 = residual_block_ref_f32(x, w, b, gamma, beta)
    assert jnp.allclose(out, ref_bf16, atol=2e-3, rtol=2e-3), "mismatch vs bf16-matmul reference"
    assert jnp.allclose(out, ref_f32, atol=3e-2, rtol=3e-2), "mismatch vs f32 reference"

    # ---- case 2: K-split plan (forced at small shape) with a ragged final batch tile. ----
    B2, dim2 = 20, 256
    kx2, kw2, kb2 = jax.random.split(jax.random.PRNGKey(1), 3)
    x2 = jax.random.normal(kx2, (B2, dim2), dtype=jnp.float32)
    bound2 = 1.0 / (dim2 ** 0.5)
    w2 = jax.random.uniform(kw2, (dim2, dim2), jnp.float32, -bound2, bound2)
    b2 = jax.random.uniform(kb2, (dim2,), jnp.float32, -bound2, bound2)
    g2 = 1.0 + 0.1 * jax.random.normal(jax.random.PRNGKey(2), (dim2,), jnp.float32)
    be2 = 0.1 * jax.random.normal(jax.random.PRNGKey(3), (dim2,), jnp.float32)

    out2 = jax.block_until_ready(
        residual_block(x2, w2, b2, g2, be2, tb=8, tk=128, force_k_split=True))
    assert out2.shape == (B2, dim2)
    ref2 = residual_block_ref_bf16(x2, w2, b2, g2, be2)
    assert jnp.allclose(out2, ref2, atol=2e-3, rtol=2e-3), "K-split mismatch vs bf16 reference"

    print("KERNEL_OK")
</pallas_src>

<mosaic_0001>
module attributes {stable_mosaic.version = 11 : i64} {
  func.func @_resident_kernel(%arg0: i32, %arg1: memref<8x128xf32, #tpu.memory_space<vmem>>, %arg2: memref<128x128xbf16, #tpu.memory_space<vmem>>, %arg3: memref<1x128xf32, #tpu.memory_space<vmem>>, %arg4: memref<1x128xf32, #tpu.memory_space<vmem>>, %arg5: memref<1x128xf32, #tpu.memory_space<vmem>>, %arg6: memref<8x128xf32, #tpu.memory_space<vmem>>) attributes {dimension_semantics = [#tpu.dimension_semantics<parallel>], iteration_bounds = array<i64: 2>, scalar_prefetch = 0 : i64, scratch_operands = 0 : i64, tpu.core_type = #tpu.core_type<tc>, window_params = [{transform_indices = @transform_0, window_bounds = array<i64: 8, 128>}, {pipeline_mode = #tpu.pipeline_mode<synchronous>, transform_indices = @transform_1, window_bounds = array<i64: 128, 128>}, {pipeline_mode = #tpu.pipeline_mode<synchronous>, transform_indices = @transform_2, window_bounds = array<i64: 1, 128>}, {pipeline_mode = #tpu.pipeline_mode<synchronous>, transform_indices = @transform_3, window_bounds = array<i64: 1, 128>}, {pipeline_mode = #tpu.pipeline_mode<synchronous>, transform_indices = @transform_4, window_bounds = array<i64: 1, 128>}, {transform_indices = @transform_5, window_bounds = array<i64: 8, 128>}]} {
    %c0 = arith.constant 0 : index
    %c0_0 = arith.constant 0 : index
    %0 = vector.load %arg1[%c0, %c0_0] : memref<8x128xf32, #tpu.memory_space<vmem>>, vector<8x128xf32>
    %1 = arith.truncf %0 : vector<8x128xf32> to vector<8x128xbf16>
    %c0_1 = arith.constant 0 : index
    %c0_2 = arith.constant 0 : index
    %2 = vector.load %arg2[%c0_1, %c0_2] : memref<128x128xbf16, #tpu.memory_space<vmem>>, vector<128x128xbf16>
    %cst = arith.constant dense<0.000000e+00> : vector<8x128xf32>
    %3 = tpu.matmul %1, %2, %cst {dimension_numbers = #tpu.dot_dimension_numbers<[1], [0], [0], [1], [0, 0, 1, 1], [], []>} : vector<8x128xbf16>, vector<128x128xbf16>, vector<8x128xf32> -> vector<8x128xf32>
    %c0_3 = arith.constant 0 : index
    %c0_4 = arith.constant 0 : index
    %4 = vector.load %arg3[%c0_3, %c0_4] : memref<1x128xf32, #tpu.memory_space<vmem>>, vector<1x128xf32>
    %5 = vector.broadcast %4 : vector<1x128xf32> to vector<8x128xf32>
    %6 = arith.addf %3, %5 : vector<8x128xf32>
    %c0_5 = arith.constant 0 : index
    %c0_6 = arith.constant 0 : index
    %7 = vector.load %arg4[%c0_5, %c0_6] : memref<1x128xf32, #tpu.memory_space<vmem>>, vector<1x128xf32>
    %c0_7 = arith.constant 0 : index
    %c0_8 = arith.constant 0 : index
    %8 = vector.load %arg5[%c0_7, %c0_8] : memref<1x128xf32, #tpu.memory_space<vmem>>, vector<1x128xf32>
    %cst_9 = arith.constant dense<0.000000e+00> : vector<8xf32>
    %9 = vector.multi_reduction <add>, %6, %cst_9 [1] : vector<8x128xf32> to vector<8xf32>
    %10 = vector.shape_cast %9 : vector<8xf32> to vector<8x1xf32>
    %cst_10 = arith.constant 3.125000e-02 : f32
    %11 = vector.broadcast %cst_10 : f32 to vector<8x1xf32>
    %12 = arith.mulf %10, %11 : vector<8x1xf32>
    %13 = vector.broadcast %12 : vector<8x1xf32> to vector<8x128xf32>
    %14 = arith.subf %6, %13 : vector<8x128xf32>
    %15 = arith.mulf %14, %14 : vector<8x128xf32>
    %cst_11 = arith.constant dense<0.000000e+00> : vector<8xf32>
    %16 = vector.multi_reduction <add>, %15, %cst_11 [1] : vector<8x128xf32> to vector<8xf32>
    %17 = vector.shape_cast %16 : vector<8xf32> to vector<8x1xf32>
    %18 = arith.mulf %12, %12 : vector<8x1xf32>
    %cst_12 = arith.constant 9.600000e+01 : f32
    %19 = vector.broadcast %cst_12 : f32 to vector<8x1xf32>
    %20 = arith.mulf %19, %18 : vector<8x1xf32>
    %21 = arith.subf %17, %20 : vector<8x1xf32>
    %cst_13 = arith.constant 3.125000e-02 : f32
    %22 = vector.broadcast %cst_13 : f32 to vector<8x1xf32>
    %23 = arith.mulf %21, %22 : vector<8x1xf32>
    %cst_14 = arith.constant 9.99999974E-6 : f32
    %24 = vector.broadcast %cst_14 : f32 to vector<8x1xf32>
    %25 = arith.addf %23, %24 : vector<8x1xf32>
    %26 = math.rsqrt %25 : vector<8x1xf32>
    %27 = vector.broadcast %26 : vector<8x1xf32> to vector<8x128xf32>
    %28 = arith.mulf %14, %27 : vector<8x128xf32>
    %29 = vector.broadcast %7 : vector<1x128xf32> to vector<8x128xf32>
    %30 = arith.mulf %28, %29 : vector<8x128xf32>
    %31 = vector.broadcast %8 : vector<1x128xf32> to vector<8x128xf32>
    %32 = arith.addf %30, %31 : vector<8x128xf32>
    %cst_15 = arith.constant 0.000000e+00 : f32
    %33 = vector.broadcast %cst_15 : f32 to vector<8x128xf32>
    %34 = arith.maximumf %32, %33 : vector<8x128xf32>
    %35 = arith.addf %0, %34 : vector<8x128xf32>
    %c0_16 = arith.constant 0 : index
    %c0_17 = arith.constant 0 : index
    %36 = vector.load %arg6[%c0_16, %c0_17] : memref<8x128xf32, #tpu.memory_space<vmem>>, vector<8x128xf32>
    tpu.vector_store %arg6[%c0_16, %c0_17], %35 {strides = array<i32>} : memref<8x128xf32, #tpu.memory_space<vmem>>, vector<8x128xf32>,
    return
  }
  func.func @transform_0(%arg0: i32) -> (i32, i32) {
    %c0_i32 = arith.constant 0 : i32
    %c0_i32_0 = arith.constant 0 : i32
    return %arg0, %c0_i32 : i32, i32
  }
  func.func @transform_1(%arg0: i32) -> (i32, i32) {
    %c0_i32 = arith.constant 0 : i32
    %c0_i32_0 = arith.constant 0 : i32
    %c0_i32_1 = arith.constant 0 : i32
    return %c0_i32, %c0_i32_0 : i32, i32
  }
  func.func @transform_2(%arg0: i32) -> (i32, i32) {
    %c0_i32 = arith.constant 0 : i32
    %c0_i32_0 = arith.constant 0 : i32
    %c0_i32_1 = arith.constant 0 : i32
    return %c0_i32, %c0_i32_0 : i32, i32
  }
  func.func @transform_3(%arg0: i32) -> (i32, i32) {
    %c0_i32 = arith.constant 0 : i32
    %c0_i32_0 = arith.constant 0 : i32
    %c0_i32_1 = arith.constant 0 : i32
    return %c0_i32, %c0_i32_0 : i32, i32
  }
  func.func @transform_4(%arg0: i32) -> (i32, i32) {
    %c0_i32 = arith.constant 0 : i32
    %c0_i32_0 = arith.constant 0 : i32
    %c0_i32_1 = arith.constant 0 : i32
    return %c0_i32, %c0_i32_0 : i32, i32
  }
  func.func @transform_5(%arg0: i32) -> (i32, i32) {
    %c0_i32 = arith.constant 0 : i32
    %c0_i32_0 = arith.constant 0 : i32
    return %arg0, %c0_i32 : i32, i32
  }
}

</mosaic_0001>

<bundles_post_ra>
// kernel: tpu_custom_call.1
= control target key start
LH: loop header
LB: loop body
LE: loop exit
PB: predicated region body
PF: predicated region fallthrough
CT: control target
= control target key end

     0   :  { %10 = vsyncpa [#allocation3], 0  ;;  %s997_s0 = inlined_call_operand.hbm [shape: f32[16,128], index: 0, kind: input, shape index: {}]   ;;  %s998_s1 = inlined_call_operand.hbm [shape: bf16[128,128], index: 1, kind: input, shape index: {}]   ;;  %s999_s2 = inlined_call_operand.vmem [shape: f32[1,128], index: 2, kind: input, shape index: {}]   ;;  %s1000_s3 = inlined_call_operand.vmem [shape: f32[1,128], index: 3, kind: input, shape index: {}]   ;;  %s1001_s4 = inlined_call_operand.vmem [shape: f32[1,128], index: 4, kind: input, shape index: {}]   ;;  %s1002_s5 = inlined_call_operand.hbm [shape: f32[16,128], index: 5, kind: output, shape index: {}]  }
   0x1   :  { %12 = vsyncpa [#allocation3 + $0x1], 0 }
   0x2   :  { %13 = vsyncpa [#allocation6], 0 }
   0x3   :  { %14 = vsyncpa [#allocation4], 0 }
   0x4   :  { %16 = vsyncpa [#allocation4 + $0x1], 0  ;;  %s788_s18 = smov 0   ;;  %s790_s19 = smov 0  }
   0x5   :  { %s792_s20 = smov 0   ;;  %s794_s21 = smov 0  }
   0x6 LB: > { %s809_s22 = sadd.s32 4294967295, %s749_s21   ;;  %s496_s23 = sadd.s32 4294967294, %s749_s21   ;;  %s749_s21 = sphi %s794_s21, %s1022_s21   ;;  %s745_s20 = sphi %s792_s20, %s1021_s20   ;;  %s741_s19 = sphi %s790_s19, %s1020_s19   ;;  %s737_s18 = sphi %s788_s18, %s1019_s18  }
   0x7   : > { %p42_p0 = scmp.ne.s32.totalorder %s741_s19, %s737_s18  ;;  %p1003_p1 = scmp.eq.s32.totalorder %s809_s22, 0 }
   0x8   : > { %p156_p3 = scmp.eq.s32.totalorder %s496_s23, 1  ;;  %p497_p5 = scmp.ge.s32.totalorder %s749_s21, 1 }
   0x9   : > { %p818_p4 = por %p1003_p1, %p42_p0  ;;  %p163_p7 = scmp.lt.s32.totalorder %s749_s21, 3 }
   0xa   : > { %p823_p6 = por %p156_p3, %p42_p0  ;;  %s751_s27 = smov [#allocation5]  }
   0xb   : > { %s1006_s24 = scalar_select %p818_p4, 1, 0 }
   0xc   : > { %s1007_s25 = scalar_select %p823_p6, 1, 0 }
   0xd   : > { %p828_p8 = pnand %p497_p5, %p163_p7  ;;  %s175_s28 = sshll.u32 %s751_s27, 4  ;;  %s832_s28 = int_to_ptr.vmem [resolvable:$true] %s175_s28 }
   0xe   : > { %s844_s30 = sadd.s32 1, %s749_s21   ;;  %s29_s6 = sadd.s32 1, %s745_s20 }
   0xf   : > { %s1008_s26 = scalar_select %p828_p8, 1, 0 }
  0x10   : > { %p558_p9 = pneg %p828_p8  ;;  %s26_s7 = ssub.s32 %s749_s21, %s844_s30 }
  0x11   : > { %s621_s10 = scalar_lea.hbm %s998_s1, 1024 }
  0x12   : > { %p839_p11 = pnand %p558_p9, %p1003_p1  ;;  %p622_p12 = scmp.ne.s32.totalorder %s998_s1, %s621_s10 }
  0x13   : > { %p628_p5 = scmp.lt.u32.totalorder %s621_s10, %s998_s1 }
  0x14   : > { %p623_p13 = pneg %p839_p11 }
  0x16   : > { %p624_p0 = pnand %p623_p13, %p622_p12 }
  0x18   : > { %p625_p3 = pneg %p624_p0 }
  0x1a   : > { %p630_p7 = pnand %p628_p5, %p625_p3 }
  0x1c   : > { %633 = shalt.err (!%p630_p7)
}
  0x1d   : > { %s634_s15 = scalar_lea.vmem %s832_s28, 1024  ;;  %p642_p2 = scmp.lt.s32.totalorder %s832_s28, %s832_s28 }
  0x1e   : > { %p635_p9 = scmp.ne.s32.totalorder %s832_s28, %s634_s15  ;;  %p643_p6 = scmp.lt.s32.totalorder %s634_s15, %s634_s15 }
  0x20   : > { %p637_p10 = pnand %p635_p9, %p623_p13  ;;  %p644_p4 = por %p643_p6, %p642_p2 }
  0x22   : > { %p638_p1 = pneg %p637_p10 }
  0x24   : > { %p645_p8 = pnand %p644_p4, %p638_p1 }
  0x26   : > { %648 = shalt.err (!%p645_p8)
}
  0x27   : > { %s752_s16 = smov 64   ;;  %s753_s17 = smov 4  }
  0x28   : > { %561 = dma.hbm_to_vmem [thread:$0]  (!%p839_p11), %s998_s1, 1024, %s832_s28, [#allocation6], %s752_s16, %s752_s16, %s753_s17  }
  0x29   : > { %p27_p2 = scmp.eq.s32.totalorder %s26_s7, 0  ;;  %p36_p1 = scmp.ne.s32.totalorder %s745_s20, %s741_s19 }
  0x2a   : > { %p37_p4 = scmp.eq.s32.totalorder %s749_s21, 0  ;;  %p571_p6 = scmp.lt.s32.totalorder %s749_s21, 2 }
  0x2b   : > { %s875_s8 = scalar_select %p27_p2, %s745_s20, %s29_s6  }
  0x2c   : > { %p38_p8 = por %p37_p4, %p36_p1  ;;  %p1010_p10 = scmp.eq.s32.totalorder %s809_s22, 1 }
  0x2d   : > { %s198_s10 = sand.u32 1, %s745_s20   ;;  %s501_s11 = sshll.u32 %s749_s21, 7 }
  0x2e   : > { %p879_p12 = por %p1010_p10, %p36_p1  ;;  %s500_s12 = sshll.u32 %s198_s10, 3 }
  0x2f   : > { %s888_s14 = scalar_lea.hbm %s997_s0, %s501_s11  ;;  %s202_s28 = scalar_lea.vmem [#allocation2], %s500_s12 }
  0x30   : > { %s209_s6 = sshll.u32 %s202_s28, 4  ;;  %p890_p11 = pnand %p571_p6, %p38_p8  ;;  %s894_s6 = int_to_ptr.vmem [resolvable:$true] %s209_s6 }
  0x31   : > { %s199_s15 = scalar_lea.sflag [#allocation3], %s198_s10  ;;  %s649_s16 = scalar_lea.hbm %s888_s14, 128 }
  0x32   : > { %p650_p13 = scmp.ne.s32.totalorder %s888_s14, %s649_s16  ;;  %p651_p0 = pneg %p890_p11 }
  0x33   : > { %s654_s27 = scalar_lea.hbm %s997_s0, 256  ;;  %p655_p7 = scmp.lt.u32.totalorder %s888_s14, %s997_s0 }
  0x34   : > { %p652_p3 = pnand %p651_p0, %p650_p13  ;;  %p656_p9 = scmp.lt.u32.totalorder %s654_s27, %s649_s16 }
  0x35   : > { %p658_p1 = scmp.lt.u32.totalorder %s649_s16, %s888_s14 }
  0x36   : > { %p653_p5 = pneg %p652_p3  ;;  %p657_p2 = por %p656_p9, %p655_p7 }
  0x38   : > { %p659_p4 = por %p658_p1, %p657_p2 }
  0x3a   : > { %p660_p6 = pnand %p659_p4, %p653_p5 }
  0x3c   : > { %663 = shalt.err (!%p660_p6)
}
  0x3d   : > { %s664_s10 = scalar_lea.vmem %s894_s6, 128  ;;  %s754_s29 = smov [#allocation2]  }
  0x3e   : > { %p665_p8 = scmp.ne.s32.totalorder %s894_s6, %s664_s10  ;;  %s669_s13 = sshll.u32 %s754_s29, 4  ;;  %s670_s13 = int_to_ptr.vmem [resolvable:$false] %s669_s13 }
  0x3f   : > { %s671_s28 = scalar_lea.vmem %s670_s13, 256  ;;  %p672_p3 = scmp.lt.s32.totalorder %s894_s6, %s670_s13 }
  0x40   : > { %p667_p10 = pnand %p665_p8, %p651_p0  ;;  %p673_p7 = scmp.lt.s32.totalorder %s671_s28, %s664_s10 }
  0x42   : > { %p668_p13 = pneg %p667_p10  ;;  %p674_p9 = por %p673_p7, %p672_p3 }
  0x44   : > { %p675_p2 = pnand %p674_p9, %p668_p13 }
  0x46   : > { %678 = shalt.err (!%p675_p2)
}
  0x47   : > { %565 = dma.hbm_to_vmem [thread:$0]  (!%p890_p11), %s888_s14, 128, %s894_s6, %s199_s15  }
  0x48   : > { %p1013_p5 = scmp.ne.s32.totalorder %s1008_s26, 0 }
  0x49   : > { %s924_s16 = sand.u32 (!%p1013_p5), 1, %s741_s19   ;;  %p1014_p0 = scmp.ne.s32.totalorder (!%p1013_p5), %s1006_s24, 0 }
  0x4a   : > { %218 = sbr.rel (%p1013_p5) target bundleno = 663 (0x297), region = 40  ;;  %s503_s17 = sshll.u32 (!%p1013_p5), %s924_s16, 3 }
  0x4b   : > { %s221_s23 = scalar_lea.sflag (!%p1013_p5), [#allocation3], %s924_s16  ;;  %s224_s27 = scalar_lea.vmem (!%p1013_p5), [#allocation2], %s503_s17 }
  0x51   : > { %724 = dma.done.wait (%p1014_p0), %s221_s23, 128  }
  0x52   : > { %726 = vsyncadd (%p1014_p0), %s221_s23, 4294967168  ;;  %p1015_p11 = scmp.eq.s32.totalorder %s809_s22, 0 }
  0x54   : > { %728 = dma.done.wait (%p1015_p11), [#allocation6], 1024   ;;  %p1016_p1 = pmov %p1015_p11 }
  0x55   : > { %v755_v0 = vmov 0.0   ;;  %vm756_vm0 = vmmov 0   ;;  %v611_v1 = vld [vmem:[#allocation5] sm:$0xff]   ;;  %v612_v2 = vld [vmem:[#allocation5 + $0x8] sm:$0xff]   ;;  %v613_v3 = vld [vmem:[#allocation5 + $0x10] sm:$0xff]   ;;  %s518_s11 = sshll.u32 %s809_s22, 7 }
  0x56   : > { %730 = vsyncadd (%p1016_p1), [#allocation6], 4294966272  ;;  %530 = vmatprep.subr.bf16.mxu0 %v755_v0  ;;  %546 = vmatprep.mubr.msk.bf16.mxu0 %vm756_vm0, %v755_v0  ;;  %v614_v4 = vld [vmem:[#allocation5 + $0x18] sm:$0xff]   ;;  %v615_v5 = vld [vmem:[#allocation5 + $0x20] sm:$0xff]   ;;  %s254_s12 = scalar_lea.vmem [#allocation7], %s503_s17  ;;  %s953_s28 = scalar_lea.hbm %s1002_s5, %s518_s11 }
  0x57   : > { %531 = vmatpush3.bf16.msra.mxu0 %v611_v1  ;;  %v616_v6 = vld [vmem:[#allocation5 + $0x28] sm:$0xff]   ;;  %v617_v7 = vld [vmem:[#allocation5 + $0x30] sm:$0xff]   ;;  %v618_v8 = vld [vmem:[#allocation5 + $0x38] sm:$0xff]   ;;  %s416_s10 = sshll.u32 %s254_s12, 4  ;;  %s403_s23 = scalar_lea.sflag [#allocation4], %s924_s16  ;;  %s955_s10 = int_to_ptr.vmem [resolvable:$true] %s416_s10 }
  0x58   : > { %532 = vmatprep.subr.bf16.mxu0 %v755_v0  ;;  %v256_v9 = vld [vmem:[%s224_s27] sm:$0xff]  ;;  %s679_s27 = scalar_lea.vmem %s955_s10, 128  ;;  %s757_s22 = smov [#allocation7]  }
  0x59   : > { %v257_v10 = vpack.c.bf16 %v256_v9, %v256_v9  ;;  %v506_v11 = vld [vmem:[%s999_s2] ss:$0 sm:$0xff]  ;;  %p680_p4 = scmp.ne.s32.totalorder %s955_s10, %s679_s27  ;;  %s683_s17 = sshll.u32 %s757_s22, 4  ;;  %s684_s17 = int_to_ptr.vmem [resolvable:$false] %s683_s17 }
  0x5a   : > { %v515_v28 = vld [vmem:[%s1000_s3] ss:$0 sm:$0xff]  ;;  %s685_s24 = scalar_lea.vmem %s684_s17, 256  ;;  %p686_p10 = scmp.lt.s32.totalorder %s955_s10, %s684_s17 }
  0x5b   : > { %533 = vmatpush3.bf16.msra.mxu0 %v612_v2  ;;  %v516_v30 = vld [vmem:[%s1001_s4] ss:$0 sm:$0xff]  ;;  %p681_p6 = pnand %p680_p4, %p879_p12  ;;  %p687_p13 = scmp.lt.s32.totalorder %s685_s24, %s679_s27 }
  0x5c   : > { %534 = vmatprep.subr.bf16.mxu0 %v755_v0 }
  0x5d   : > { %p682_p8 = pneg %p681_p6  ;;  %p688_p3 = por %p687_p13, %p686_p10 }
  0x5f   : > { %535 = vmatpush3.bf16.msra.mxu0 %v613_v3  ;;  %p689_p7 = pnand %p688_p3, %p682_p8 }
  0x60   : > { %536 = vmatprep.subr.bf16.mxu0 %v755_v0 }
  0x63   : > { %537 = vmatpush3.bf16.msra.mxu0 %v614_v4 }
  0x64   : > { %538 = vmatprep.subr.bf16.mxu0 %v755_v0 }
  0x67   : > { %539 = vmatpush3.bf16.msra.mxu0 %v615_v5 }
  0x68   : > { %540 = vmatprep.subr.bf16.mxu0 %v755_v0 }
  0x6b   : > { %541 = vmatpush3.bf16.msra.mxu0 %v616_v6 }
  0x6c   : > { %542 = vmatprep.subr.bf16.mxu0 %v755_v0 }
  0x6f   : > { %543 = vmatpush3.bf16.msra.mxu0 %v617_v7 }
  0x70   : > { %544 = vmatprep.subr.bf16.mxu0 %v755_v0 }
  0x73   : > { %545 = vmatpush3.bf16.msra.mxu0 %v618_v8 }
  0x76   : > { %547 = vmatmul.mubr.bf16.vlgmr.msra.gmra.mrb[0].mxu0 %v257_v10 }
 0x149   : > { %v363_v12 = vpop.f32.mrb[0].mxu0 }
 0x14a   : > { %v364_v13 = vadd.f32 %v506_v11, %v363_v12  ;;  %v548_v14 = vpop.f32.mrb[1].mxu0 }
 0x14b   : > { %v366_v15 = vpop.f32.mrb[2].mxu0 }
 0x14c   : > { %371 = vadd.xlane.f32.xlu0 %v364_v13  ;;  %v549_v16 = vpop.f32.mrb[3].mxu0 }
 0x1d9   : > { %v372_v17 = vpop.xlane.xlu0 %371 }
 0x1da   : > { %v373_v18 = vmul.f32 0.03125, %v372_v17 }
 0x1dc   : > { %v374_v19 = vsub.f32 %v364_v13, %v373_v18  ;;  %v378_v21 = vmul.f32 %v373_v18, %v373_v18 }
 0x1de   : > { %v375_v20 = vmul.f32 %v374_v19, %v374_v19  ;;  %v379_v22 = vmul.f32 96.0, %v378_v21 }
 0x1e0   : > { %376 = vadd.xlane.f32.xlu0 %v375_v20 }
 0x26d   : > { %v377_v23 = vpop.xlane.xlu0 %376 }
 0x26e   : > { %v380_v24 = vsub.f32 %v377_v23, %v379_v22 }
 0x270   : > { %v381_v25 = vmul.f32 0.03125, %v380_v24 }
 0x272   : > { %v382_v26 = vadd.f32 1e-05, %v381_v25 }
 0x274   : > { %619 = vrsqrt.f32 %v382_v26 }
 0x27e   : > { %v620_v27 = vpop.eup %619 }
 0x27f   : > { %v384_v29 = vmul.f32 %v620_v27, %v374_v19 }
 0x281   : > { %v391_v31 = vmul.f32 %v515_v28, %v384_v29 }
 0x283   : > { %v398_v32 = vadd.f32 %v516_v30, %v391_v31 }
 0x285   : > { %v399_v33 = vmax.f32 %v398_v32, 0.0 }
 0x287   : > { %v400_v34 = vadd.f32 %v399_v33, %v256_v9 }
 0x289   : > { %401 = vst [vmem:[%s254_s12] sm:$0xff] %v400_v34 }
 0x28a   : > { %692 = shalt.err (!%p689_p7)
}
 0x28b   : > { %s693_s16 = scalar_lea.hbm %s953_s28, 128  ;;  %s697_s6 = scalar_lea.hbm %s1002_s5, 256 }
 0x28c   : > { %p694_p9 = scmp.ne.s32.totalorder %s953_s28, %s693_s16  ;;  %p698_p0 = scmp.lt.u32.totalorder %s953_s28, %s1002_s5 }
 0x28d   : > { %p699_p11 = scmp.lt.u32.totalorder %s697_s6, %s693_s16  ;;  %p701_p4 = scmp.lt.u32.totalorder %s693_s16, %s953_s28 }
 0x28e   : > { %p695_p2 = pnand %p694_p9, %p879_p12 }
 0x28f   : > { %p700_p1 = por %p699_p11, %p698_p0 }
 0x290   : > { %p696_p5 = pneg %p695_p2 }
 0x291   : > { %p702_p6 = por %p701_p4, %p700_p1 }
 0x293   : > { %p703_p8 = pnand %p702_p6, %p696_p5 }
 0x295   : > { %706 = shalt.err (!%p703_p8)
}
 0x296   : > { %556 = dma.vmem_to_hbm [thread:$0]  (%p879_p12), %s955_s10, 128, %s953_s28, %s403_s23  }
 0x297 PF: > { %s428_s11 = sand.u32 1, %s737_s18   ;;  %p1017_p10 = scmp.ne.s32.totalorder %s1007_s25, 0 }
 0x298   : > { %p1018_p13 = scmp.ge.s32.totalorder %s749_s21, 2  ;;  %s429_s12 = scalar_lea.sflag [#allocation4], %s428_s11 }
 0x29a   : > { %p567_p3 = pnand %p1018_p13, %p1017_p10 }
 0x29c   : > { %732 = dma.done.wait (!%p567_p3), %s429_s12, 128  }
 0x29d   : > { %734 = vsyncadd (!%p567_p3), %s429_s12, 4294967168  ;;  %p19_p7 = scmp.ge.s32.totalorder %s844_s30, 4   ;;  %s1019_s18 = smov %s741_s19 }
 0x29e   : > { %s1020_s19 = smov %s745_s20  ;;  %s1021_s20 = smov %s875_s8 }
 0x29f   : > { %s1022_s21 = smov %s844_s30  ;;  %21 = sbr.rel (!%p19_p7) target bundleno = 6 (0x6), region = 89 }
 0x2a6   :  { %434 = vsyncpa [#allocation3], 1 }
 0x2a7   :  { %436 = vsyncpa [#allocation3 + $0x1], 1 }
 0x2a8   :  { %437 = vsyncpa [#allocation6], 1 }
 0x2a9   :  { %438 = vsyncpa [#allocation4], 1 }
 0x2aa   :  { %440 = vsyncpa [#allocation4 + $0x1], 1 }

</bundles_post_ra>
